<compile_context>
chip_gen: v6e
topology: v6e:2x2x1
jax: 0.10.0
libtpu: 0.0.40
codegen_flags: <defaults>
</compile_context>

<pallas_src>
import math

import jax
import jax.numpy as jnp
from jax.experimental import pallas as pl
from jax.experimental.pallas import tpu as pltpu


def choose(n, k):
    return math.comb(n, k)


# ----------------------------------------------------------------------------
# Fused forward kernel
# ----------------------------------------------------------------------------
def _make_fused_kernel(n_dense_layers, n_over_layers, num_sparse, last_is_reduction):
    F = num_sparse

    def kernel(*refs):
        pos = 0
        x_ref = refs[pos]; pos += 1            # (TB, dense_in)  bf16
        sp_ref = refs[pos]; pos += 1           # (F, TB, D)      bf16
        dense_wb = []
        for _ in range(n_dense_layers):
            dense_wb.append((refs[pos], refs[pos + 1]))
            pos += 2
        w0d_ref = refs[pos]                    # (D, N1)  bf16  (dense-emb rows)
        w0i_ref = refs[pos + 1]                # (P, N1)  f32   (interaction rows)
        b0_ref = refs[pos + 2]                 # (1, N1)  f32
        pos += 3
        over_wb = []
        for _ in range(n_over_layers - 1):
            over_wb.append((refs[pos], refs[pos + 1]))
            pos += 2
        o_ref = refs[pos]

        # ---- DenseArch: Linear + ReLU stack (bf16 MXU, f32 accumulate) ----
        x = x_ref[...]                                        # bf16
        y = None
        for (w_ref, b_ref) in dense_wb:
            y = jnp.dot(x, w_ref[...], preferred_element_type=jnp.float32)
            y = jnp.maximum(y + b_ref[...], 0.0)              # f32 epilogue (VPU)
            x = y.astype(jnp.bfloat16)
        dense_emb_f32 = y                                     # (TB, D) f32
        dense_emb_bf16 = x                                    # (TB, D) bf16

        # ---- InteractionArch fused into the first OverArch layer ----
        # OverArch input = [dense_emb, triu_k1(C @ C^T)] with C = [dense; sparse].
        # Pairwise dot products are folded directly into the layer-0
        # pre-activation as rank-1 updates, in torch.triu_indices(offset=1)
        # row-major order, so nothing interaction-related ever hits HBM.
        acc = jnp.dot(dense_emb_bf16, w0d_ref[...],
                      preferred_element_type=jnp.float32)     # (TB, N1) f32
        acc = acc + b0_ref[...]

        sp = [sp_ref[f].astype(jnp.float32) for f in range(F)]  # F x (TB, D) f32

        row = 0
        # pairs (0, j): dense row vs. each sparse feature
        for f in range(F):
            piece = jnp.sum(dense_emb_f32 * sp[f], axis=-1, keepdims=True)
            acc = acc + piece * w0i_ref[row:row + 1, :]
            row += 1
        # pairs (i+1, j+1), i < j: sparse-sparse interactions
        for i in range(F):
            for j in range(i + 1, F):
                piece = jnp.sum(sp[i] * sp[j], axis=-1, keepdims=True)
                acc = acc + piece * w0i_ref[row:row + 1, :]
                row += 1

        y = jnp.maximum(acc, 0.0) if n_over_layers > 1 else acc  # (TB, N1) f32

        # ---- remaining OverArch layers ----
        n_rest = len(over_wb)
        for li, (w_ref, b_ref) in enumerate(over_wb):
            is_last = li == n_rest - 1
            if is_last and last_is_reduction:
                # N == 1 head: VPU row reduction instead of a 1-lane MXU matmul.
                y = jnp.sum(y * w_ref[...], axis=-1, keepdims=True) + b_ref[...]
            else:
                z = jnp.dot(y.astype(jnp.bfloat16), w_ref[...],
                            preferred_element_type=jnp.float32)
                z = z + b_ref[...]
                y = z if is_last else jnp.maximum(z, 0.0)

        o_ref[...] = y.astype(o_ref.dtype)

    return kernel


# ----------------------------------------------------------------------------
# Module construction (parameters prepared once) + forward
# ----------------------------------------------------------------------------
def _init_linear_params(key, in_f, out_f):
    kw, kb = jax.random.split(key)
    bound = 1.0 / math.sqrt(in_f)
    w = jax.random.uniform(kw, (out_f, in_f), jnp.float32, minval=-bound, maxval=bound)
    b = jax.random.uniform(kb, (out_f,), jnp.float32, minval=-bound, maxval=bound)
    return w, b


def make_fused_dense_modules(key, embedding_dim, num_sparse_features,
                             dense_in_features, dense_arch_layer_sizes,
                             over_arch_layer_sizes, tile_b=256):
    # TODO(synk): dense_in_features <= 0 (nn.Identity dense arch, no dense row
    # in the interaction) branch is not implemented in the fused kernel.
    assert dense_in_features > 0
    assert len(dense_arch_layer_sizes) >= 1
    assert dense_arch_layer_sizes[-1] == embedding_dim
    assert len(over_arch_layer_sizes) >= 1
    assert tile_b % 8 == 0

    F = num_sparse_features
    D = embedding_dim
    P = F + choose(F, 2)                      # == choose(F + 1, 2) triu pairs
    over_in = D + P
    n_out = over_arch_layer_sizes[-1]
    n_dense = len(dense_arch_layer_sizes)
    n_over = len(over_arch_layer_sizes)
    last_is_reduction = (n_over >= 2) and (n_out == 1)

    # ---- parameters: pre-transposed / pre-split / pre-cast at build time ----
    flat_params = []

    in_f = dense_in_features
    for out_f in dense_arch_layer_sizes:
        key, sub = jax.random.split(key)
        w, b = _init_linear_params(sub, in_f, out_f)
        flat_params.append(w.T.astype(jnp.bfloat16))         # (in, out)  -> MXU
        flat_params.append(b.reshape(1, out_f))               # (1, out) f32 -> VPU
        in_f = out_f

    in_f = over_in
    for li, out_f in enumerate(over_arch_layer_sizes):
        key, sub = jax.random.split(key)
        w, b = _init_linear_params(sub, in_f, out_f)
        if li == 0:
            wt = w.T                                           # (over_in, out)
            flat_params.append(wt[:D].astype(jnp.bfloat16))    # dense-emb rows
            flat_params.append(wt[D:].astype(jnp.float32))     # interaction rows
            flat_params.append(b.reshape(1, out_f))
        elif li == n_over - 1 and last_is_reduction:
            flat_params.append(w.astype(jnp.float32))          # keep (1, in) for VPU dot
            flat_params.append(b.reshape(1, out_f))
        else:
            flat_params.append(w.T.astype(jnp.bfloat16))
            flat_params.append(b.reshape(1, out_f))
        in_f = out_f

    kernel = _make_fused_kernel(n_dense, n_over, F, last_is_reduction)

    # Constant index_map -> weights are DMA'd once and stay resident in VMEM.
    def _resident_spec(arr):
        nd = arr.ndim
        return pl.BlockSpec(arr.shape, lambda i, _nd=nd: (0,) * _nd)

    param_specs = [_resident_spec(p) for p in flat_params]

    def forward(dense_features, embedded_sparse_features):
        B = dense_features.shape[0]
        assert dense_features.shape == (B, dense_in_features)
        assert embedded_sparse_features.shape == (B, F, D)

        # XLA glue: bf16 cast + feature-major transpose so each sparse feature
        # is a clean lane-dense (TILE_B, D) slab inside the kernel.
        x = dense_features.astype(jnp.bfloat16)
        sp = jnp.transpose(embedded_sparse_features, (1, 0, 2)).astype(jnp.bfloat16)

        tb = B if B <= tile_b else tile_b
        grid = (pl.cdiv(B, tb),)

        in_specs = [
            pl.BlockSpec((tb, dense_in_features), lambda i: (i, 0)),
            pl.BlockSpec((F, tb, D), lambda i: (0, i, 0)),
        ] + param_specs
        out_spec = pl.BlockSpec((tb, n_out), lambda i: (i, 0))

        return pl.pallas_call(
            kernel,
            out_shape=jax.ShapeDtypeStruct((B, n_out), jnp.float32),
            grid=grid,
            in_specs=in_specs,
            out_specs=out_spec,
            compiler_params=pltpu.CompilerParams(
                dimension_semantics=("parallel",),   # shard batch tiles across TCs
                vmem_limit_bytes=32 * 1024 * 1024,
            ),
        )(x, sp, *flat_params)

    return forward


# ----------------------------------------------------------------------------
# Demo
# ----------------------------------------------------------------------------
if __name__ == "__main__":
    key = jax.random.PRNGKey(0)
    k_params, k_dense, k_sparse = jax.random.split(key, 3)

    B = 32
    dense_in_features = 8
    embedding_dim = 16
    num_sparse_features = 4
    dense_arch_layer_sizes = [32, embedding_dim]
    over_arch_layer_sizes = [32, 16, 1]

    fwd = make_fused_dense_modules(
        k_params,
        embedding_dim,
        num_sparse_features,
        dense_in_features,
        dense_arch_layer_sizes,
        over_arch_layer_sizes,
        tile_b=16,                     # 2 batch tiles -> exercises the tiled grid
    )

    dense_features = jax.random.normal(
        k_dense, (B, dense_in_features), jnp.float32
    )
    embedded_sparse_features = jax.random.normal(
        k_sparse, (B, num_sparse_features, embedding_dim), jnp.float32
    )

    logits = jax.jit(fwd)(dense_features, embedded_sparse_features)
    jax.block_until_ready(logits)
    assert logits.shape == (B, over_arch_layer_sizes[-1])
    print("KERNEL_OK")
</pallas_src>

<mosaic_0001>
module attributes {stable_mosaic.version = 11 : i64} {
  func.func @kernel(%arg0: i32, %arg1: memref<16x8xbf16, #tpu.memory_space<vmem>>, %arg2: memref<4x16x16xbf16, #tpu.memory_space<vmem>>, %arg3: memref<8x32xbf16, #tpu.memory_space<vmem>>, %arg4: memref<1x32xf32, #tpu.memory_space<vmem>>, %arg5: memref<32x16xbf16, #tpu.memory_space<vmem>>, %arg6: memref<1x16xf32, #tpu.memory_space<vmem>>, %arg7: memref<16x32xbf16, #tpu.memory_space<vmem>>, %arg8: memref<10x32xf32, #tpu.memory_space<vmem>>, %arg9: memref<1x32xf32, #tpu.memory_space<vmem>>, %arg10: memref<32x16xbf16, #tpu.memory_space<vmem>>, %arg11: memref<1x16xf32, #tpu.memory_space<vmem>>, %arg12: memref<1x16xf32, #tpu.memory_space<vmem>>, %arg13: memref<1x1xf32, #tpu.memory_space<vmem>>, %arg14: memref<16x1xf32, #tpu.memory_space<vmem>>) attributes {dimension_semantics = [#tpu.dimension_semantics<parallel>], iteration_bounds = array<i64: 2>, scalar_prefetch = 0 : i64, scratch_operands = 0 : i64, tpu.core_type = #tpu.core_type<tc>, window_params = [{transform_indices = @transform_0, window_bounds = array<i64: 16, 8>}, {transform_indices = @transform_1, window_bounds = array<i64: 4, 16, 16>}, {pipeline_mode = #tpu.pipeline_mode<synchronous>, transform_indices = @transform_2, window_bounds = array<i64: 8, 32>}, {pipeline_mode = #tpu.pipeline_mode<synchronous>, transform_indices = @transform_3, window_bounds = array<i64: 1, 32>}, {pipeline_mode = #tpu.pipeline_mode<synchronous>, transform_indices = @transform_4, window_bounds = array<i64: 32, 16>}, {pipeline_mode = #tpu.pipeline_mode<synchronous>, transform_indices = @transform_5, window_bounds = array<i64: 1, 16>}, {pipeline_mode = #tpu.pipeline_mode<synchronous>, transform_indices = @transform_6, window_bounds = array<i64: 16, 32>}, {pipeline_mode = #tpu.pipeline_mode<synchronous>, transform_indices = @transform_7, window_bounds = array<i64: 10, 32>}, {pipeline_mode = #tpu.pipeline_mode<synchronous>, transform_indices = @transform_8, window_bounds = array<i64: 1, 32>}, {pipeline_mode = #tpu.pipeline_mode<synchronous>, transform_indices = @transform_9, window_bounds = array<i64: 32, 16>}, {pipeline_mode = #tpu.pipeline_mode<synchronous>, transform_indices = @transform_10, window_bounds = array<i64: 1, 16>}, {pipeline_mode = #tpu.pipeline_mode<synchronous>, transform_indices = @transform_11, window_bounds = array<i64: 1, 16>}, {pipeline_mode = #tpu.pipeline_mode<synchronous>, transform_indices = @transform_12, window_bounds = array<i64: 1, 1>}, {transform_indices = @transform_13, window_bounds = array<i64: 16, 1>}]} {
    %c0 = arith.constant 0 : index
    %c0_0 = arith.constant 0 : index
    %0 = vector.load %arg1[%c0, %c0_0] : memref<16x8xbf16, #tpu.memory_space<vmem>>, vector<16x8xbf16>
    %c0_1 = arith.constant 0 : index
    %c0_2 = arith.constant 0 : index
    %1 = vector.load %arg3[%c0_1, %c0_2] : memref<8x32xbf16, #tpu.memory_space<vmem>>, vector<8x32xbf16>
    %cst = arith.constant dense<0.000000e+00> : vector<16x32xf32>
    %2 = tpu.matmul %0, %1, %cst {dimension_numbers = #tpu.dot_dimension_numbers<[1], [0], [0], [1], [0, 0, 1, 1], [], []>} : vector<16x8xbf16>, vector<8x32xbf16>, vector<16x32xf32> -> vector<16x32xf32>
    %c0_3 = arith.constant 0 : index
    %c0_4 = arith.constant 0 : index
    %3 = vector.load %arg4[%c0_3, %c0_4] : memref<1x32xf32, #tpu.memory_space<vmem>>, vector<1x32xf32>
    %4 = vector.broadcast %3 : vector<1x32xf32> to vector<16x32xf32>
    %5 = arith.addf %2, %4 : vector<16x32xf32>
    %cst_5 = arith.constant 0.000000e+00 : f32
    %6 = vector.broadcast %cst_5 : f32 to vector<16x32xf32>
    %7 = arith.maximumf %5, %6 : vector<16x32xf32>
    %8 = arith.truncf %7 : vector<16x32xf32> to vector<16x32xbf16>
    %c0_6 = arith.constant 0 : index
    %c0_7 = arith.constant 0 : index
    %9 = vector.load %arg5[%c0_6, %c0_7] : memref<32x16xbf16, #tpu.memory_space<vmem>>, vector<32x16xbf16>
    %cst_8 = arith.constant dense<0.000000e+00> : vector<16x16xf32>
    %10 = tpu.matmul %8, %9, %cst_8 {dimension_numbers = #tpu.dot_dimension_numbers<[1], [0], [0], [1], [0, 0, 1, 1], [], []>} : vector<16x32xbf16>, vector<32x16xbf16>, vector<16x16xf32> -> vector<16x16xf32>
    %c0_9 = arith.constant 0 : index
    %c0_10 = arith.constant 0 : index
    %11 = vector.load %arg6[%c0_9, %c0_10] : memref<1x16xf32, #tpu.memory_space<vmem>>, vector<1x16xf32>
    %12 = vector.broadcast %11 : vector<1x16xf32> to vector<16x16xf32>
    %13 = arith.addf %10, %12 : vector<16x16xf32>
    %cst_11 = arith.constant 0.000000e+00 : f32
    %14 = vector.broadcast %cst_11 : f32 to vector<16x16xf32>
    %15 = arith.maximumf %13, %14 : vector<16x16xf32>
    %16 = arith.truncf %15 : vector<16x16xf32> to vector<16x16xbf16>
    %c0_12 = arith.constant 0 : index
    %c0_13 = arith.constant 0 : index
    %17 = vector.load %arg7[%c0_12, %c0_13] : memref<16x32xbf16, #tpu.memory_space<vmem>>, vector<16x32xbf16>
    %cst_14 = arith.constant dense<0.000000e+00> : vector<16x32xf32>
    %18 = tpu.matmul %16, %17, %cst_14 {dimension_numbers = #tpu.dot_dimension_numbers<[1], [0], [0], [1], [0, 0, 1, 1], [], []>} : vector<16x16xbf16>, vector<16x32xbf16>, vector<16x32xf32> -> vector<16x32xf32>
    %c0_15 = arith.constant 0 : index
    %c0_16 = arith.constant 0 : index
    %19 = vector.load %arg9[%c0_15, %c0_16] : memref<1x32xf32, #tpu.memory_space<vmem>>, vector<1x32xf32>
    %20 = vector.broadcast %19 : vector<1x32xf32> to vector<16x32xf32>
    %21 = arith.addf %18, %20 : vector<16x32xf32>
    %c0_17 = arith.constant 0 : index
    %c0_18 = arith.constant 0 : index
    %c0_19 = arith.constant 0 : index
    %22 = vector.load %arg2[%c0_17, %c0_18, %c0_19] : memref<4x16x16xbf16, #tpu.memory_space<vmem>>, vector<1x16x16xbf16>
    %23 = vector.shape_cast %22 : vector<1x16x16xbf16> to vector<16x16xbf16>
    %24 = arith.extf %23 : vector<16x16xbf16> to vector<16x16xf32>
    %c1 = arith.constant 1 : index
    %c0_20 = arith.constant 0 : index
    %c0_21 = arith.constant 0 : index
    %25 = vector.load %arg2[%c1, %c0_20, %c0_21] : memref<4x16x16xbf16, #tpu.memory_space<vmem>>, vector<1x16x16xbf16>
    %26 = vector.shape_cast %25 : vector<1x16x16xbf16> to vector<16x16xbf16>
    %27 = arith.extf %26 : vector<16x16xbf16> to vector<16x16xf32>
    %c2 = arith.constant 2 : index
    %c0_22 = arith.constant 0 : index
    %c0_23 = arith.constant 0 : index
    %28 = vector.load %arg2[%c2, %c0_22, %c0_23] : memref<4x16x16xbf16, #tpu.memory_space<vmem>>, vector<1x16x16xbf16>
    %29 = vector.shape_cast %28 : vector<1x16x16xbf16> to vector<16x16xbf16>
    %30 = arith.extf %29 : vector<16x16xbf16> to vector<16x16xf32>
    %c3 = arith.constant 3 : index
    %c0_24 = arith.constant 0 : index
    %c0_25 = arith.constant 0 : index
    %31 = vector.load %arg2[%c3, %c0_24, %c0_25] : memref<4x16x16xbf16, #tpu.memory_space<vmem>>, vector<1x16x16xbf16>
    %32 = vector.shape_cast %31 : vector<1x16x16xbf16> to vector<16x16xbf16>
    %33 = arith.extf %32 : vector<16x16xbf16> to vector<16x16xf32>
    %34 = arith.mulf %15, %24 : vector<16x16xf32>
    %cst_26 = arith.constant dense<0.000000e+00> : vector<16xf32>
    %35 = vector.multi_reduction <add>, %34, %cst_26 [1] : vector<16x16xf32> to vector<16xf32>
    %36 = vector.shape_cast %35 : vector<16xf32> to vector<16x1xf32>
    %c0_27 = arith.constant 0 : index
    %c0_28 = arith.constant 0 : index
    %37 = vector.load %arg8[%c0_27, %c0_28] : memref<10x32xf32, #tpu.memory_space<vmem>>, vector<1x32xf32>
    %38 = vector.broadcast %36 : vector<16x1xf32> to vector<16x32xf32>
    %39 = vector.broadcast %37 : vector<1x32xf32> to vector<16x32xf32>
    %40 = arith.mulf %38, %39 : vector<16x32xf32>
    %41 = arith.addf %21, %40 : vector<16x32xf32>
    %42 = arith.mulf %15, %27 : vector<16x16xf32>
    %cst_29 = arith.constant dense<0.000000e+00> : vector<16xf32>
    %43 = vector.multi_reduction <add>, %42, %cst_29 [1] : vector<16x16xf32> to vector<16xf32>
    %44 = vector.shape_cast %43 : vector<16xf32> to vector<16x1xf32>
    %c1_30 = arith.constant 1 : index
    %c0_31 = arith.constant 0 : index
    %45 = vector.load %arg8[%c1_30, %c0_31] : memref<10x32xf32, #tpu.memory_space<vmem>>, vector<1x32xf32>
    %46 = vector.broadcast %44 : vector<16x1xf32> to vector<16x32xf32>
    %47 = vector.broadcast %45 : vector<1x32xf32> to vector<16x32xf32>
    %48 = arith.mulf %46, %47 : vector<16x32xf32>
    %49 = arith.addf %41, %48 : vector<16x32xf32>
    %50 = arith.mulf %15, %30 : vector<16x16xf32>
    %cst_32 = arith.constant dense<0.000000e+00> : vector<16xf32>
    %51 = vector.multi_reduction <add>, %50, %cst_32 [1] : vector<16x16xf32> to vector<16xf32>
    %52 = vector.shape_cast %51 : vector<16xf32> to vector<16x1xf32>
    %c2_33 = arith.constant 2 : index
    %c0_34 = arith.constant 0 : index
    %53 = vector.load %arg8[%c2_33, %c0_34] : memref<10x32xf32, #tpu.memory_space<vmem>>, vector<1x32xf32>
    %54 = vector.broadcast %52 : vector<16x1xf32> to vector<16x32xf32>
    %55 = vector.broadcast %53 : vector<1x32xf32> to vector<16x32xf32>
    %56 = arith.mulf %54, %55 : vector<16x32xf32>
    %57 = arith.addf %49, %56 : vector<16x32xf32>
    %58 = arith.mulf %15, %33 : vector<16x16xf32>
    %cst_35 = arith.constant dense<0.000000e+00> : vector<16xf32>
    %59 = vector.multi_reduction <add>, %58, %cst_35 [1] : vector<16x16xf32> to vector<16xf32>
    %60 = vector.shape_cast %59 : vector<16xf32> to vector<16x1xf32>
    %c3_36 = arith.constant 3 : index
    %c0_37 = arith.constant 0 : index
    %61 = vector.load %arg8[%c3_36, %c0_37] : memref<10x32xf32, #tpu.memory_space<vmem>>, vector<1x32xf32>
    %62 = vector.broadcast %60 : vector<16x1xf32> to vector<16x32xf32>
    %63 = vector.broadcast %61 : vector<1x32xf32> to vector<16x32xf32>
    %64 = arith.mulf %62, %63 : vector<16x32xf32>
    %65 = arith.addf %57, %64 : vector<16x32xf32>
    %66 = arith.mulf %24, %27 : vector<16x16xf32>
    %cst_38 = arith.constant dense<0.000000e+00> : vector<16xf32>
    %67 = vector.multi_reduction <add>, %66, %cst_38 [1] : vector<16x16xf32> to vector<16xf32>
    %68 = vector.shape_cast %67 : vector<16xf32> to vector<16x1xf32>
    %c4 = arith.constant 4 : index
    %c0_39 = arith.constant 0 : index
    %69 = vector.load %arg8[%c4, %c0_39] : memref<10x32xf32, #tpu.memory_space<vmem>>, vector<1x32xf32>
    %70 = vector.broadcast %68 : vector<16x1xf32> to vector<16x32xf32>
    %71 = vector.broadcast %69 : vector<1x32xf32> to vector<16x32xf32>
    %72 = arith.mulf %70, %71 : vector<16x32xf32>
    %73 = arith.addf %65, %72 : vector<16x32xf32>
    %74 = arith.mulf %24, %30 : vector<16x16xf32>
    %cst_40 = arith.constant dense<0.000000e+00> : vector<16xf32>
    %75 = vector.multi_reduction <add>, %74, %cst_40 [1] : vector<16x16xf32> to vector<16xf32>
    %76 = vector.shape_cast %75 : vector<16xf32> to vector<16x1xf32>
    %c5 = arith.constant 5 : index
    %c0_41 = arith.constant 0 : index
    %77 = vector.load %arg8[%c5, %c0_41] : memref<10x32xf32, #tpu.memory_space<vmem>>, vector<1x32xf32>
    %78 = vector.broadcast %76 : vector<16x1xf32> to vector<16x32xf32>
    %79 = vector.broadcast %77 : vector<1x32xf32> to vector<16x32xf32>
    %80 = arith.mulf %78, %79 : vector<16x32xf32>
    %81 = arith.addf %73, %80 : vector<16x32xf32>
    %82 = arith.mulf %24, %33 : vector<16x16xf32>
    %cst_42 = arith.constant dense<0.000000e+00> : vector<16xf32>
    %83 = vector.multi_reduction <add>, %82, %cst_42 [1] : vector<16x16xf32> to vector<16xf32>
    %84 = vector.shape_cast %83 : vector<16xf32> to vector<16x1xf32>
    %c6 = arith.constant 6 : index
    %c0_43 = arith.constant 0 : index
    %85 = vector.load %arg8[%c6, %c0_43] : memref<10x32xf32, #tpu.memory_space<vmem>>, vector<1x32xf32>
    %86 = vector.broadcast %84 : vector<16x1xf32> to vector<16x32xf32>
    %87 = vector.broadcast %85 : vector<1x32xf32> to vector<16x32xf32>
    %88 = arith.mulf %86, %87 : vector<16x32xf32>
    %89 = arith.addf %81, %88 : vector<16x32xf32>
    %90 = arith.mulf %27, %30 : vector<16x16xf32>
    %cst_44 = arith.constant dense<0.000000e+00> : vector<16xf32>
    %91 = vector.multi_reduction <add>, %90, %cst_44 [1] : vector<16x16xf32> to vector<16xf32>
    %92 = vector.shape_cast %91 : vector<16xf32> to vector<16x1xf32>
    %c7 = arith.constant 7 : index
    %c0_45 = arith.constant 0 : index
    %93 = vector.load %arg8[%c7, %c0_45] : memref<10x32xf32, #tpu.memory_space<vmem>>, vector<1x32xf32>
    %94 = vector.broadcast %92 : vector<16x1xf32> to vector<16x32xf32>
    %95 = vector.broadcast %93 : vector<1x32xf32> to vector<16x32xf32>
    %96 = arith.mulf %94, %95 : vector<16x32xf32>
    %97 = arith.addf %89, %96 : vector<16x32xf32>
    %98 = arith.mulf %27, %33 : vector<16x16xf32>
    %cst_46 = arith.constant dense<0.000000e+00> : vector<16xf32>
    %99 = vector.multi_reduction <add>, %98, %cst_46 [1] : vector<16x16xf32> to vector<16xf32>
    %100 = vector.shape_cast %99 : vector<16xf32> to vector<16x1xf32>
    %c8 = arith.constant 8 : index
    %c0_47 = arith.constant 0 : index
    %101 = vector.load %arg8[%c8, %c0_47] : memref<10x32xf32, #tpu.memory_space<vmem>>, vector<1x32xf32>
    %102 = vector.broadcast %100 : vector<16x1xf32> to vector<16x32xf32>
    %103 = vector.broadcast %101 : vector<1x32xf32> to vector<16x32xf32>
    %104 = arith.mulf %102, %103 : vector<16x32xf32>
    %105 = arith.addf %97, %104 : vector<16x32xf32>
    %106 = arith.mulf %30, %33 : vector<16x16xf32>
    %cst_48 = arith.constant dense<0.000000e+00> : vector<16xf32>
    %107 = vector.multi_reduction <add>, %106, %cst_48 [1] : vector<16x16xf32> to vector<16xf32>
    %108 = vector.shape_cast %107 : vector<16xf32> to vector<16x1xf32>
    %c9 = arith.constant 9 : index
    %c0_49 = arith.constant 0 : index
    %109 = vector.load %arg8[%c9, %c0_49] : memref<10x32xf32, #tpu.memory_space<vmem>>, vector<1x32xf32>
    %110 = vector.broadcast %108 : vector<16x1xf32> to vector<16x32xf32>
    %111 = vector.broadcast %109 : vector<1x32xf32> to vector<16x32xf32>
    %112 = arith.mulf %110, %111 : vector<16x32xf32>
    %113 = arith.addf %105, %112 : vector<16x32xf32>
    %cst_50 = arith.constant 0.000000e+00 : f32
    %114 = vector.broadcast %cst_50 : f32 to vector<16x32xf32>
    %115 = arith.maximumf %113, %114 : vector<16x32xf32>
    %116 = arith.truncf %115 : vector<16x32xf32> to vector<16x32xbf16>
    %c0_51 = arith.constant 0 : index
    %c0_52 = arith.constant 0 : index
    %117 = vector.load %arg10[%c0_51, %c0_52] : memref<32x16xbf16, #tpu.memory_space<vmem>>, vector<32x16xbf16>
    %cst_53 = arith.constant dense<0.000000e+00> : vector<16x16xf32>
    %118 = tpu.matmul %116, %117, %cst_53 {dimension_numbers = #tpu.dot_dimension_numbers<[1], [0], [0], [1], [0, 0, 1, 1], [], []>} : vector<16x32xbf16>, vector<32x16xbf16>, vector<16x16xf32> -> vector<16x16xf32>
    %c0_54 = arith.constant 0 : index
    %c0_55 = arith.constant 0 : index
    %119 = vector.load %arg11[%c0_54, %c0_55] : memref<1x16xf32, #tpu.memory_space<vmem>>, vector<1x16xf32>
    %120 = vector.broadcast %119 : vector<1x16xf32> to vector<16x16xf32>
    %121 = arith.addf %118, %120 : vector<16x16xf32>
    %cst_56 = arith.constant 0.000000e+00 : f32
    %122 = vector.broadcast %cst_56 : f32 to vector<16x16xf32>
    %123 = arith.maximumf %121, %122 : vector<16x16xf32>
    %c0_57 = arith.constant 0 : index
    %c0_58 = arith.constant 0 : index
    %124 = vector.load %arg12[%c0_57, %c0_58] : memref<1x16xf32, #tpu.memory_space<vmem>>, vector<1x16xf32>
    %125 = vector.broadcast %124 : vector<1x16xf32> to vector<16x16xf32>
    %126 = arith.mulf %123, %125 : vector<16x16xf32>
    %cst_59 = arith.constant dense<0.000000e+00> : vector<16xf32>
    %127 = vector.multi_reduction <add>, %126, %cst_59 [1] : vector<16x16xf32> to vector<16xf32>
    %128 = vector.shape_cast %127 : vector<16xf32> to vector<16x1xf32>
    %c0_60 = arith.constant 0 : index
    %c0_61 = arith.constant 0 : index
    %129 = vector.load %arg13[%c0_60, %c0_61] : memref<1x1xf32, #tpu.memory_space<vmem>>, vector<1x1xf32>
    %130 = vector.broadcast %129 : vector<1x1xf32> to vector<16x1xf32>
    %131 = arith.addf %128, %130 : vector<16x1xf32>
    %c0_62 = arith.constant 0 : index
    %c0_63 = arith.constant 0 : index
    %132 = vector.load %arg14[%c0_62, %c0_63] : memref<16x1xf32, #tpu.memory_space<vmem>>, vector<16x1xf32>
    tpu.vector_store %arg14[%c0_62, %c0_63], %131 {strides = array<i32>} : memref<16x1xf32, #tpu.memory_space<vmem>>, vector<16x1xf32>,
    return
  }
  func.func @transform_0(%arg0: i32) -> (i32, i32) {
    %c0_i32 = arith.constant 0 : i32
    %c0_i32_0 = arith.constant 0 : i32
    return %arg0, %c0_i32 : i32, i32
  }
  func.func @transform_1(%arg0: i32) -> (i32, i32, i32) {
    %c0_i32 = arith.constant 0 : i32
    %c0_i32_0 = arith.constant 0 : i32
    %c0_i32_1 = arith.constant 0 : i32
    return %c0_i32, %arg0, %c0_i32_0 : i32, i32, i32
  }
  func.func @transform_2(%arg0: i32) -> (i32, i32) {
    %c0_i32 = arith.constant 0 : i32
    %c0_i32_0 = arith.constant 0 : i32
    %c0_i32_1 = arith.constant 0 : i32
    return %c0_i32, %c0_i32_0 : i32, i32
  }
  func.func @transform_3(%arg0: i32) -> (i32, i32) {
    %c0_i32 = arith.constant 0 : i32
    %c0_i32_0 = arith.constant 0 : i32
    %c0_i32_1 = arith.constant 0 : i32
    return %c0_i32, %c0_i32_0 : i32, i32
  }
  func.func @transform_4(%arg0: i32) -> (i32, i32) {
    %c0_i32 = arith.constant 0 : i32
    %c0_i32_0 = arith.constant 0 : i32
    %c0_i32_1 = arith.constant 0 : i32
    return %c0_i32, %c0_i32_0 : i32, i32
  }
  func.func @transform_5(%arg0: i32) -> (i32, i32) {
    %c0_i32 = arith.constant 0 : i32
    %c0_i32_0 = arith.constant 0 : i32
    %c0_i32_1 = arith.constant 0 : i32
    return %c0_i32, %c0_i32_0 : i32, i32
  }
  func.func @transform_6(%arg0: i32) -> (i32, i32) {
    %c0_i32 = arith.constant 0 : i32
    %c0_i32_0 = arith.constant 0 : i32
    %c0_i32_1 = arith.constant 0 : i32
    return %c0_i32, %c0_i32_0 : i32, i32
  }
  func.func @transform_7(%arg0: i32) -> (i32, i32) {
    %c0_i32 = arith.constant 0 : i32
    %c0_i32_0 = arith.constant 0 : i32
    %c0_i32_1 = arith.constant 0 : i32
    return %c0_i32, %c0_i32_0 : i32, i32
  }
  func.func @transform_8(%arg0: i32) -> (i32, i32) {
    %c0_i32 = arith.constant 0 : i32
    %c0_i32_0 = arith.constant 0 : i32
    %c0_i32_1 = arith.constant 0 : i32
    return %c0_i32, %c0_i32_0 : i32, i32
  }
  func.func @transform_9(%arg0: i32) -> (i32, i32) {
    %c0_i32 = arith.constant 0 : i32
    %c0_i32_0 = arith.constant 0 : i32
    %c0_i32_1 = arith.constant 0 : i32
    return %c0_i32, %c0_i32_0 : i32, i32
  }
  func.func @transform_10(%arg0: i32) -> (i32, i32) {
    %c0_i32 = arith.constant 0 : i32
    %c0_i32_0 = arith.constant 0 : i32
    %c0_i32_1 = arith.constant 0 : i32
    return %c0_i32, %c0_i32_0 : i32, i32
  }
  func.func @transform_11(%arg0: i32) -> (i32, i32) {
    %c0_i32 = arith.constant 0 : i32
    %c0_i32_0 = arith.constant 0 : i32
    %c0_i32_1 = arith.constant 0 : i32
    return %c0_i32, %c0_i32_0 : i32, i32
  }
  func.func @transform_12(%arg0: i32) -> (i32, i32) {
    %c0_i32 = arith.constant 0 : i32
    %c0_i32_0 = arith.constant 0 : i32
    %c0_i32_1 = arith.constant 0 : i32
    return %c0_i32, %c0_i32_0 : i32, i32
  }
  func.func @transform_13(%arg0: i32) -> (i32, i32) {
    %c0_i32 = arith.constant 0 : i32
    %c0_i32_0 = arith.constant 0 : i32
    return %arg0, %c0_i32 : i32, i32
  }
}

</mosaic_0001>

<bundles_post_ra>
// kernel: forward.1
= control target key start
LH: loop header
LB: loop body
LE: loop exit
PB: predicated region body
PF: predicated region fallthrough
CT: control target
= control target key end

     0   :  { %s1509_s0 = inlined_call_operand.vmem [shape: bf16[32,8], index: 0, kind: input, shape index: {}]   ;;  %s1510_s1 = inlined_call_operand.vmem [shape: bf16[4,32,16], index: 1, kind: input, shape index: {}]   ;;  %s1511_s2 = inlined_call_operand.vmem [shape: bf16[8,32], index: 2, kind: input, shape index: {}]   ;;  %s1512_s3 = inlined_call_operand.vmem [shape: f32[1,32], index: 3, kind: input, shape index: {}]   ;;  %s1513_s4 = inlined_call_operand.vmem [shape: bf16[32,16], index: 4, kind: input, shape index: {}]   ;;  %s1514_s5 = inlined_call_operand.vmem [shape: f32[1,16], index: 5, kind: input, shape index: {}]   ;;  %s1515_s6 = inlined_call_operand.vmem [shape: bf16[16,32], index: 6, kind: input, shape index: {}]   ;;  %s1516_s7 = inlined_call_operand.vmem [shape: f32[10,32], index: 7, kind: input, shape index: {}]   ;;  %s1517_s8 = inlined_call_operand.vmem [shape: f32[1,32], index: 8, kind: input, shape index: {}]   ;;  %s1518_s9 = inlined_call_operand.vmem [shape: bf16[32,16], index: 9, kind: input, shape index: {}]   ;;  %s1519_s10 = inlined_call_operand.vmem [shape: f32[1,16], index: 10, kind: input, shape index: {}]   ;;  %s1520_s11 = inlined_call_operand.vmem [shape: f32[1,16], index: 11, kind: input, shape index: {}]   ;;  %s1521_s12 = inlined_call_operand.<no memory space> [shape: f32[1,1], index: 12, kind: input, shape index: {}]   ;;  %s1522_s13 = inlined_call_operand.vmem [shape: f32[32,1], index: 13, kind: output, shape index: {}]  }
   0x1   :  { %v18_v0 = vstv %s1521_s12 }
   0x2   :  { %19 = vst [vmem:[#allocation2] sm:$0x1] %v18_v0 }
   0x3   :  { %s1336_s27 = smov 0   ;;  %s1338_s28 = smov 0  }
   0x4   :  { %s1340_s29 = smov 0  }
   0x5 LB: > { %s1100_s12 = sadd.s32 4294967295, %s1259_s29   ;;  %s1353_s30 = sadd.s32 1, %s1259_s29   ;;  %s1259_s29 = sphi %s1340_s29, %s1525_s29   ;;  %s1255_s28 = sphi %s1338_s28, %s1524_s28   ;;  %s1251_s27 = sphi %s1336_s27, %s1523_s27  }
   0x6   : > { %s55_s14 = ssub.s32 %s1259_s29, %s1353_s30  ;;  %s58_s15 = sadd.s32 1, %s1255_s28 }
   0x7   : > { %p56_p0 = scmp.eq.s32.totalorder %s55_s14, 0  ;;  %p65_p1 = scmp.ne.s32.totalorder %s1255_s28, %s1251_s27 }
   0x8   : > { %p66_p2 = scmp.eq.s32.totalorder %s1259_s29, 0  ;;  %p1103_p4 = scmp.ge.s32.totalorder %s1259_s29, 2 }
   0x9   : > { %s1362_s16 = scalar_select %p56_p0, %s1255_s28, %s58_s15  }
   0xa   : > { %p67_p3 = por %p66_p2, %p65_p1  ;;  %381 = sbr.rel (%p1103_p4) target bundleno = 21 (0x15), region = 60 }
   0xf   : > { %393 = sbr.rel (!%p67_p3) target bundleno = 21 (0x15), region = 68  ;;  %s395_s17 = sand.u32 (%p67_p3), 1, %s1255_s28  }
  0x10   : > { %s1147_s18 = sshll.u32 (%p67_p3), %s1259_s29, 3  ;;  %s1104_s19 = sshll.u32 (%p67_p3), %s395_s17, 5 }
  0x11   : > { %s400_s22 = scalar_lea.vmem (%p67_p3), %s1510_s1, %s1147_s18  ;;  %s397_s23 = scalar_lea.vmem (%p67_p3), [#allocation3], %s1104_s19 }
  0x12   : > { %v417_v1 = vld [vmem:[%s400_s22] sm:$0xff] (%p67_p3)   ;;  %v421_v2 = vld [vmem:[%s400_s22 + $0x10] sm:$0xff] (%p67_p3)  }
  0x13   : > { %v425_v3 = vld [vmem:[%s400_s22 + $0x20] sm:$0xff] (%p67_p3)   ;;  %418 = vst [vmem:[%s397_s23] sm:$0xff] (%p67_p3), %v417_v1   ;;  %422 = vst [vmem:[%s397_s23 + $0x8] sm:$0xff] (%p67_p3), %v421_v2   ;;  %v429_v4 = vld [vmem:[%s400_s22 + $0x30] sm:$0xff] (%p67_p3)  }
  0x14   : > { %426 = vst [vmem:[%s397_s23 + $0x10] sm:$0xff] %v425_v3   ;;  %430 = vst [vmem:[%s397_s23 + $0x18] sm:$0xff] %v429_v4  }
  0x15 PF: > { %p1107_p5 = scmp.ge.s32.totalorder %s1259_s29, 1  ;;  %p471_p6 = scmp.lt.s32.totalorder %s1259_s29, 3 }
  0x17   : > { %p472_p7 = pnand %p1107_p5, %p471_p6 }
  0x18   : > { %s1109_s26 = sshll.u32 (!%p472_p7), %s1100_s12, 1  ;;  %s478_s23 = sand.u32 (!%p472_p7), 1, %s1251_s27  }
  0x19   : > { %475 = sbr.rel (%p472_p7) target bundleno = 1009 (0x3f1), region = 109  ;;  %p527_p8 = scmp.lt.s32.totalorder (!%p472_p7), %s1109_s26, 3 }
  0x1a   : > { %s1108_s24 = sshll.u32 (!%p472_p7), %s478_s23, 5 }
  0x1b   : > { %s480_s25 = scalar_lea.vmem (!%p472_p7), [#allocation3], %s1108_s24 }
  0x1e   : > { %v542_v5 = vld [vmem:[%s1511_s2] sm:$0xf]  ;;  %vm559_vm0 = vcmask 1043456   ;;  %v1261_v6 = vmov 0.0   ;;  %vm1262_vm1 = vmmov 0   ;;  %s1527_s26 = smov (!%p527_p8, %s1109_s26), 3 }
  0x1f   : > { %1177 = vmatprep.subr.bf16.mxu0 %v1261_v6  ;;  %v561_v7 = vsel %vm559_vm0, %v542_v5, 0  ;;  %1179 = vmatprep.mubr.msk.bf16.mxu0 %vm1262_vm1, %v1261_v6  ;;  %s1110_s29 = sshll.u32 %s1527_s26, 2  ;;  %vm555_vm2 = vcmask 64512   ;;  %v1232_v9 = vld [vmem:[%s1513_s4 + $0x8] sm:$0xff]   ;;  %v1233_v10 = vld [vmem:[%s1513_s4] sm:$0xff]   ;;  %vm630_vm3 = vcmask 261120  }
  0x20   : > { %1178 = vmatpush3.bf16.msra.mxu0 %v561_v7  ;;  %1183 = vmatprep.subr.bf16.mxu1 %v1261_v6  ;;  %s530_s15 = scalar_lea.vmem %s1509_s0, %s1110_s29  ;;  %v1113_v11 = vld [vmem:[%s1512_s3] ss:$0 sm:$0xff]  ;;  %v1149_v21 = vld [vmem:[%s480_s25] sm:$0xff]   ;;  %v1164_v22 = vld [vmem:[%s480_s25 + $0x8] sm:$0xff]   ;;  %vm693_vm4 = vcmask 130048   ;;  %s1112_s18 = sshll.u32 %s1527_s26, 3 }
  0x21   : > { %1187 = vmatprep.mubr.msk.bf16.mxu1 %vm1262_vm1, %v1261_v6  ;;  %1191 = vmatprep.subr.bf16.mxu0 %v1261_v6  ;;  %v1231_v8 = vld [vmem:[%s530_s15] sm:$0xff]   ;;  %v1151_v23 = vunpack.c.h.bf16 %v1149_v21  ;;  %v1407_v24 = vunpack.c.h.bf16 %v1164_v22  ;;  %v1150_v25 = vunpack.c.l.bf16 %v1149_v21  ;;  %v1409_v26 = vunpack.c.l.bf16 %v1164_v22  ;;  %v1165_v34 = vld [vmem:[%s480_s25 + $0x10] sm:$0xff]   ;;  %v1235_v21 = vld [vmem:[%s1518_s9 + $0x8] sm:$0xff]   ;;  %s537_s21 = scalar_lea.vmem %s1522_s13, %s1112_s18 }
  0x22   : > { %1184 = vmatpush3.bf16.msra.mxu1 %v1232_v9  ;;  %v1234_v29 = vld [vmem:[%s1515_s6] sm:$0xff]   ;;  %v1159_v36 = vunpack.c.h.bf16 %v1165_v34  ;;  %v1158_v39 = vunpack.c.l.bf16 %v1165_v34  ;;  %vm1023_vm5 = vcmask 7168  }
  0x23   : > { %1180 = vmatmul.mubr.msk.bf16.vlgmr.msra.gmra.mxu0 %vm555_vm2, %v1231_v8  ;;  %1185 = vmatprep.subr.bf16.mxu1 %v1261_v6  ;;  %v826_v27 = vmul.f32 %v1407_v24, %v1151_v23  ;;  %v825_v28 = vmul.f32 %v1409_v26, %v1150_v25  ;;  %v1116_v32 = vld [vmem:[%s1514_s5] ss:$0 sm:$0xff] }
  0x24   : > { %1193 = vmatprep.mubr.msk.bf16.mxu0 %vm1262_vm1, %v1261_v6  ;;  %1192 = vmatpush3.bf16.msra.mxu0 %v1234_v29  ;;  %v1166_v40 = vld [vmem:[%s480_s25 + $0x18] sm:$0xff]   ;;  %v843_v45 = vmul.f32 %v1159_v36, %v1151_v23  ;;  %v842_v62 = vmul.f32 %v1158_v39, %v1150_v25  ;;  %v876_v8 = vmul.f32 %v1158_v39, %v1409_v26 }
  0x25   : > { %v830_v30 = vsel %vm693_vm4, %v826_v27, 0.0  ;;  %v827_v31 = vsel %vm693_vm4, %v825_v28, 0.0  ;;  %v1163_v47 = vunpack.c.h.bf16 %v1166_v40  ;;  %v1162_v48 = vunpack.c.l.bf16 %v1166_v40  ;;  %v1236_v22 = vld [vmem:[%s1518_s9] sm:$0xff]  }
  0x26   : > { %1186 = vmatpush3.bf16.msra.mxu1 %v1233_v10  ;;  %831 = vadd.xlane.f32.xlu1 %v830_v30  ;;  %v847_v54 = vsel %vm693_vm4, %v843_v45, 0.0  ;;  %v844_v2 = vsel %vm693_vm4, %v842_v62, 0.0  ;;  %v877_v9 = vmul.f32 %v1159_v36, %v1407_v24 }
  0x27   : > { %1197 = vmatprep.subr.bf16.mxu1 %v1261_v6  ;;  %828 = vadd.xlane.f32.xlu0 %v827_v31  ;;  %v860_v55 = vmul.f32 %v1163_v47, %v1151_v23  ;;  %v859_v3 = vmul.f32 %v1162_v48, %v1150_v25 }
  0x29   : > { %v864_v58 = vsel %vm693_vm4, %v860_v55, 0.0  ;;  %v861_v7 = vsel %vm693_vm4, %v859_v3, 0.0 }
  0xe3   : > { %v597_v12 = vpop.f32.mrf.mxu0 }
  0xe4   : > { %v598_v14 = vadd.f32 %v1113_v11, %v597_v12  ;;  %v881_v12 = vsel %vm693_vm4, %v877_v9, 0.0  ;;  %v1135_v9 = vld [vmem:[%s1516_s7 + $0x6] ss:$0 sm:$0xff] }
  0xe5   : > { %v1181_v13 = vpop.f32.mrf.mxu0 }
  0xe6   : > { %v604_v18 = vmax.f32 %v598_v14, 0.0  ;;  %v893_v13 = vmul.f32 %v1162_v48, %v1409_v26  ;;  %v894_v14 = vmul.f32 %v1163_v47, %v1407_v24 }
  0xe7   : > { %v600_v15 = vpop.f32.mrf.mxu0 }
  0xe8   : > { %v601_v16 = vadd.f32 %v1113_v11, %v600_v15  ;;  %v878_v11 = vsel %vm693_vm4, %v876_v8, 0.0  ;;  %v895_v15 = vsel %vm693_vm4, %v893_v13, 0.0 }
  0xe9   : > { %v1182_v17 = vpop.f32.mrf.mxu0 }
  0xea   : > { %v605_v19 = vmax.f32 %v601_v16, 0.0  ;;  %v898_v16 = vsel %vm693_vm4, %v894_v14, 0.0  ;;  %v910_v17 = vmul.f32 %v1162_v48, %v1158_v39 }
  0xec   : > { %v606_v20 = vpack.c.bf16 %v605_v19, %v604_v18  ;;  %v911_v18 = vmul.f32 %v1163_v47, %v1159_v36  ;;  %v912_v19 = vsel %vm693_vm4, %v910_v17, 0.0 }
  0xee   : > { %1188 = vmatmul.mubr.msk.bf16.vlgmr.msra.gmra.mxu1 %vm630_vm3, %v606_v20  ;;  %v915_v20 = vsel %vm693_vm4, %v911_v18, 0.0 }
  0xef   : > { %1201 = vmatprep.mubr.msk.bf16.mxu1 %vm1262_vm1, %v1261_v6  ;;  %1198 = vmatpush3.bf16.msra.mxu1 %v1235_v21 }
  0xf0   : > { %1199 = vmatprep.subr.bf16.mxu1 %v1261_v6  ;;  %v1129_v6 = vld [vmem:[%s1516_s7] ss:$0 sm:$0xff] }
  0xf3   : > { %1200 = vmatpush3.bf16.msra.mxu1 %v1236_v22 }
 0x1ae   : > { %v668_v33 = vpop.f32.mrf.mxu1 }
 0x1af   : > { %v669_v35 = vadd.f32 %v1116_v32, %v668_v33 }
 0x1b0   : > { %v1189_v37 = vpop.f32.mrf.mxu1 }
 0x1b1   : > { %v675_v38 = vmax.f32 %v669_v35, 0.0  ;;  %v1120_v35 = vld [vmem:[%s1517_s8] ss:$0 sm:$0xff]  ;;  %v1130_v37 = vld [vmem:[%s1516_s7 + $0x1] ss:$0 sm:$0xff] }
 0x1b2   : > { %v671_v41 = vpop.f32.mrf.mxu1 }
 0x1b3   : > { %v672_v42 = vadd.f32 %v1116_v32, %v671_v41  ;;  %v774_v43 = vmul.f32 %v1409_v26, %v675_v38  ;;  %v757_v44 = vmul.f32 %v1150_v25, %v675_v38  ;;  %v791_v52 = vmul.f32 %v1158_v39, %v675_v38  ;;  %v1131_v41 = vld [vmem:[%s1516_s7 + $0x2] ss:$0 sm:$0xff] }
 0x1b4   : > { %v1190_v46 = vpop.f32.mrf.mxu1  ;;  %v808_v57 = vmul.f32 %v1162_v48, %v675_v38 }
 0x1b5   : > { %v676_v49 = vmax.f32 %v672_v42, 0.0  ;;  %v776_v50 = vsel %vm693_vm4, %v774_v43, 0.0  ;;  %v759_v51 = vsel %vm693_vm4, %v757_v44, 0.0  ;;  %v793_v56 = vsel %vm693_vm4, %v791_v52, 0.0  ;;  %v1132_v46 = vld [vmem:[%s1516_s7 + $0x3] ss:$0 sm:$0xff] }
 0x1b6   : > { %777 = vadd.xlane.f32.xlu1 %v776_v50  ;;  %760 = vadd.xlane.f32.xlu0 %v759_v51  ;;  %v810_v59 = vsel %vm693_vm4, %v808_v57, 0.0 }
 0x1b7   : > { %v677_v53 = vpack.c.bf16 %v676_v49, %v675_v38  ;;  %v775_v60 = vmul.f32 %v1407_v24, %v676_v49  ;;  %v758_v61 = vmul.f32 %v1151_v23, %v676_v49  ;;  %v792_v1 = vmul.f32 %v1159_v36, %v676_v49  ;;  %v829_v23 = vpop.xlane.xlu0 %828  ;;  %v832_v24 = vpop.xlane.xlu1 %831 }
 0x1b8   : > { %v809_v5 = vmul.f32 %v1163_v47, %v676_v49 }
 0x1b9   : > { %1194 = vmatmul.mubr.msk.bf16.vlgmr.msra.gmra.mxu0 %vm693_vm4, %v677_v53  ;;  %v779_v63 = vsel %vm693_vm4, %v775_v60, 0.0  ;;  %v762_v0 = vsel %vm693_vm4, %v758_v61, 0.0  ;;  %v796_v4 = vsel %vm693_vm4, %v792_v1, 0.0  ;;  %v1133_v53 = vld [vmem:[%s1516_s7 + $0x4] ss:$0 sm:$0xff] }
 0x1ba   : > { %848 = vadd.xlane.f32.xlu1 %v847_v54  ;;  %794 = vadd.xlane.f32.xlu0 %v793_v56  ;;  %v813_v10 = vsel %vm693_vm4, %v809_v5, 0.0  ;;  %v838_v60 = vmul.f32 %v1133_v53, %v829_v23  ;;  %v1136_v1 = vld [vmem:[%s1516_s7 + $0x7] ss:$0 sm:$0xff]  ;;  %v839_v8 = vmul.f32 %v1133_v53, %v832_v24 }
 0x1be   : > { %865 = vadd.xlane.f32.xlu1 %v864_v58  ;;  %811 = vadd.xlane.f32.xlu0 %v810_v59 }
 0x1c2   : > { %780 = vadd.xlane.f32.xlu1 %v779_v63  ;;  %763 = vadd.xlane.f32.xlu0 %v762_v0  ;;  %v1134_v0 = vld [vmem:[%s1516_s7 + $0x5] ss:$0 sm:$0xff] }
 0x1c6   : > { %797 = vadd.xlane.f32.xlu1 %v796_v4  ;;  %845 = vadd.xlane.f32.xlu0 %v844_v2 }
 0x1ca   : > { %814 = vadd.xlane.f32.xlu1 %v813_v10  ;;  %862 = vadd.xlane.f32.xlu0 %v861_v7  ;;  %v1137_v10 = vld [vmem:[%s1516_s7 + $0x8] ss:$0 sm:$0xff] }
 0x1ce   : > { %879 = vadd.xlane.f32.xlu0 %v878_v11  ;;  %882 = vadd.xlane.f32.xlu1 %v881_v12 }
 0x1d2   : > { %896 = vadd.xlane.f32.xlu0 %v895_v15  ;;  %899 = vadd.xlane.f32.xlu1 %v898_v16 }
 0x1d6   : > { %913 = vadd.xlane.f32.xlu0 %v912_v19  ;;  %916 = vadd.xlane.f32.xlu1 %v915_v20  ;;  %v1138_v20 = vld [vmem:[%s1516_s7 + $0x9] ss:$0 sm:$0xff] }
 0x23f   : > { %v761_v25 = vpop.xlane.xlu0 %760  ;;  %v778_v26 = vpop.xlane.xlu1 %777 }
 0x240   : > { %v770_v39 = vmul.f32 %v1129_v6, %v761_v25  ;;  %v787_v44 = vmul.f32 %v1130_v37, %v778_v26 }
 0x243   : > { %v795_v27 = vpop.xlane.xlu0 %794  ;;  %v849_v28 = vpop.xlane.xlu1 %848 }
 0x244   : > { %v804_v49 = vmul.f32 %v1131_v41, %v795_v27  ;;  %v856_v16 = vmul.f32 %v1134_v0, %v849_v28 }
 0x247   : > { %v812_v29 = vpop.xlane.xlu0 %811  ;;  %v866_v30 = vpop.xlane.xlu1 %865 }
 0x248   : > { %v821_v56 = vmul.f32 %v1132_v46, %v812_v29  ;;  %v873_v22 = vmul.f32 %v1135_v9, %v866_v30  ;;  %v1139_v30 = vld [vmem:[%s1519_s10] ss:$0 sm:$0xff] }
 0x24b   : > { %v764_v31 = vpop.xlane.xlu0 %763  ;;  %v781_v32 = vpop.xlane.xlu1 %780 }
 0x24c   : > { %v771_v50 = vmul.f32 %v1129_v6, %v764_v31  ;;  %v788_v57 = vmul.f32 %v1130_v37, %v781_v32 }
 0x24f   : > { %v846_v33 = vpop.xlane.xlu0 %845  ;;  %v798_v34 = vpop.xlane.xlu1 %797 }
 0x250   : > { %v805_v61 = vmul.f32 %v1131_v41, %v798_v34  ;;  %v855_v5 = vmul.f32 %v1134_v0, %v846_v33 }
 0x253   : > { %v863_v36 = vpop.xlane.xlu0 %862  ;;  %v815_v42 = vpop.xlane.xlu1 %814 }
 0x254   : > { %v822_v3 = vmul.f32 %v1132_v46, %v815_v42  ;;  %v872_v14 = vmul.f32 %v1135_v9, %v863_v36  ;;  %v1143_v42 = vld [vmem:[%s1520_s11] ss:$0 sm:$0xff] }
 0x257   : > { %v880_v48 = vpop.xlane.xlu0 %879  ;;  %v883_v55 = vpop.xlane.xlu1 %882 }
 0x258   : > { %v889_v15 = vmul.f32 %v1136_v1, %v880_v48  ;;  %v890_v27 = vmul.f32 %v1136_v1, %v883_v55 }
 0x25b   : > { %v897_v2 = vpop.xlane.xlu0 %896  ;;  %v900_v11 = vpop.xlane.xlu1 %899 }
 0x25c   : > { %v906_v19 = vmul.f32 %v1137_v10, %v897_v2  ;;  %v907_v33 = vmul.f32 %v1137_v10, %v900_v11 }
 0x25f   : > { %v914_v21 = vpop.xlane.xlu0 %913  ;;  %v917_v25 = vpop.xlane.xlu1 %916 }
 0x260   : > { %v923_v31 = vmul.f32 %v1138_v20, %v914_v21  ;;  %v924_v34 = vmul.f32 %v1138_v20, %v917_v25 }
 0x279   : > { %v731_v38 = vpop.f32.mrf.mxu0 }
 0x27a   : > { %v732_v40 = vadd.f32 %v1120_v35, %v731_v38 }
 0x27b   : > { %v1195_v43 = vpop.f32.mrf.mxu0 }
 0x27c   : > { %v772_v45 = vadd.f32 %v770_v39, %v732_v40 }
 0x27d   : > { %v734_v47 = vpop.f32.mrf.mxu0 }
 0x27e   : > { %v789_v51 = vadd.f32 %v787_v44, %v772_v45  ;;  %v735_v52 = vadd.f32 %v1120_v35, %v734_v47 }
 0x27f   : > { %v1196_v54 = vpop.f32.mrf.mxu0 }
 0x280   : > { %v806_v58 = vadd.f32 %v804_v49, %v789_v51  ;;  %v773_v59 = vadd.f32 %v771_v50, %v735_v52  ;;  %v1144_v52 = vld [vmem:[#allocation2] ss:$0 sm:$0xff] }
 0x282   : > { %v823_v62 = vadd.f32 %v821_v56, %v806_v58  ;;  %v790_v63 = vadd.f32 %v788_v57, %v773_v59 }
 0x284   : > { %v840_v4 = vadd.f32 %v838_v60, %v823_v62  ;;  %v807_v7 = vadd.f32 %v805_v61, %v790_v63 }
 0x286   : > { %v857_v12 = vadd.f32 %v855_v5, %v840_v4  ;;  %v824_v13 = vadd.f32 %v822_v3, %v807_v7 }
 0x288   : > { %v874_v17 = vadd.f32 %v872_v14, %v857_v12  ;;  %v841_v18 = vadd.f32 %v839_v8, %v824_v13 }
 0x28a   : > { %v891_v23 = vadd.f32 %v889_v15, %v874_v17  ;;  %v858_v24 = vadd.f32 %v856_v16, %v841_v18 }
 0x28c   : > { %v875_v26 = vadd.f32 %v873_v22, %v858_v24  ;;  %v908_v29 = vadd.f32 %v906_v19, %v891_v23 }
 0x28e   : > { %v892_v32 = vadd.f32 %v890_v27, %v875_v26  ;;  %v925_v6 = vadd.f32 %v923_v31, %v908_v29 }
 0x290   : > { %v909_v28 = vadd.f32 %v907_v33, %v892_v32  ;;  %v927_v36 = vmax.f32 %v925_v6, 0.0 }
 0x292   : > { %v926_v35 = vadd.f32 %v924_v34, %v909_v28 }
 0x294   : > { %v928_v37 = vmax.f32 %v926_v35, 0.0 }
 0x296   : > { %v929_v38 = vpack.c.bf16 %v928_v37, %v927_v36 }
 0x298   : > { %1202 = vmatmul.mubr.msk.bf16.vlgmr.msra.gmra.mxu1 %vm630_vm3, %v929_v38 }
 0x358   : > { %v990_v39 = vpop.f32.mrf.mxu1 }
 0x359   : > { %v991_v40 = vadd.f32 %v1139_v30, %v990_v39 }
 0x35a   : > { %v1203_v41 = vpop.f32.mrf.mxu1 }
 0x35b   : > { %v997_v43 = vmax.f32 %v991_v40, 0.0 }
 0x35c   : > { %v993_v44 = vpop.f32.mrf.mxu1 }
 0x35d   : > { %v994_v45 = vadd.f32 %v1139_v30, %v993_v44  ;;  %v1006_v46 = vmul.f32 %v1143_v42, %v997_v43 }
 0x35e   : > { %v1204_v47 = vpop.f32.mrf.mxu1 }
 0x35f   : > { %v998_v48 = vmax.f32 %v994_v45, 0.0  ;;  %v1008_v49 = vsel %vm693_vm4, %v1006_v46, 0.0 }
 0x360   : > { %1009 = vadd.xlane.f32.xlu0 %v1008_v49 }
 0x361   : > { %v1007_v50 = vmul.f32 %v1143_v42, %v998_v48 }
 0x363   : > { %v1011_v51 = vsel %vm693_vm4, %v1007_v50, 0.0 }
 0x364   : > { %1012 = vadd.xlane.f32.xlu1 %v1011_v51 }
 0x3e9   : > { %v1010_v53 = vpop.xlane.xlu0 %1009 }
 0x3ea   : > { %v1021_v54 = vadd.f32 %v1144_v52, %v1010_v53 }
 0x3ec   : > { %1024 = vst.msk [vmem:[%s537_s21] sm:$0xff] %vm1023_vm5, %v1021_v54 }
 0x3ed   : > { %v1013_v55 = vpop.xlane.xlu1 %1012 }
 0x3ee   : > { %v1022_v56 = vadd.f32 %v1144_v52, %v1013_v55 }
 0x3f0   : > { %1025 = vst.msk [vmem:[%s537_s21 + $0x8] sm:$0xff] %vm1023_vm5, %v1022_v56 }
 0x3f1 PF: > { %p22_p9 = scmp.ge.s32.totalorder %s1353_s30, 4   ;;  %s1523_s27 = smov %s1255_s28 }
 0x3f2   : > { %s1524_s28 = smov %s1362_s16  ;;  %s1525_s29 = smov %s1353_s30 }
 0x3f3   :  { %24 = sbr.rel (!%p22_p9) target bundleno = 5 (0x5), region = 154 }

</bundles_post_ra>
